<compile_context>
chip_gen: v6e
topology: v6e:2x2x1
jax: 0.10.0
libtpu: 0.0.40
codegen_flags: <defaults>
</compile_context>

<pallas_src>
import functools

import jax
import jax.numpy as jnp
from jax.experimental import pallas as pl
from jax.experimental.pallas import tpu as pltpu


def _project3d_kernel(p_ref, pts_ref, pix_ref, depth_ref, *, height, width, eps):
    # p_ref:     (B, 12) f32 in SMEM   -- flattened P = K[:3,:] @ T per batch
    # pts_ref:   (4, tile_n) f32 VMEM  -- homogeneous points, lane-dense
    # pix_ref:   (2, tile_n) f32 VMEM
    # depth_ref: (1, tile_n) f32 VMEM
    b = pl.program_id(0)

    # Row loads of the homogeneous points; each is (1, tile_n), lane-dense.
    x = pts_ref[0:1, :]
    y = pts_ref[1:2, :]
    zc = pts_ref[2:3, :]
    w = pts_ref[3:4, :]

    def proj_row(r):
        # Broadcast-FMA on the VPU: scalar (from SMEM) * vector, summed.
        return (p_ref[b, 4 * r + 0] * x
                + p_ref[b, 4 * r + 1] * y
                + p_ref[b, 4 * r + 2] * zc
                + p_ref[b, 4 * r + 3] * w)

    cam_z = proj_row(2) + eps                      # (1, tile_n)
    inv_z = pl.reciprocal(cam_z, approx=False)     # exact: keeps 1e-5 tolerance

    sx = 2.0 / (width - 1.0)
    sy = 2.0 / (height - 1.0)

    # Write output rows directly (no concatenate temp); unmasked lane-dense vst.
    pix_ref[0:1, :] = proj_row(0) * inv_z * sx - 1.0
    pix_ref[1:2, :] = proj_row(1) * inv_z * sy - 1.0
    depth_ref[...] = cam_z


def _pick_tile_n(n, cap):
    """Largest clean lane-dense tile: n itself if small, else a multiple of 128."""
    if n <= cap:
        return n
    t = (cap // 128) * 128
    while t >= 128:
        if n % t == 0:
            return t
        t -= 128
    # Fall back to a non-dividing tile; Pallas masks the partial final block.
    return (cap // 128) * 128


def project3d(points, K, T, batch_size, height, width, eps=1e-7, tile_n_cap=32768):
    """points: (B, 4, H*W) f32, K: (B, 4, 4) f32, T: (B, 4, 4) f32.

    Returns (pix_coords (B, H, W, 2), next_depth (B, 1, H, W)), matching the
    PyTorch Project3D module.
    """
    B = batch_size
    N = height * width
    assert points.shape == (B, 4, N)
    assert K.shape == (B, 4, 4) and T.shape == (B, 4, 4)

    # Tiny per-batch projection matrix, precomputed outside the kernel and
    # handed to the kernel as 12 scalars per batch through SMEM.
    P = jnp.einsum("bij,bjk->bik", K[:, :3, :], T).astype(jnp.float32)  # (B, 3, 4)
    P_flat = P.reshape(B, 12)

    tile_n = _pick_tile_n(N, tile_n_cap)
    n_tiles = pl.cdiv(N, tile_n)

    kernel = functools.partial(
        _project3d_kernel,
        height=float(height), width=float(width), eps=float(eps))

    pix_flat, depth_flat = pl.pallas_call(
        kernel,
        out_shape=(
            jax.ShapeDtypeStruct((B, 2, N), jnp.float32),
            jax.ShapeDtypeStruct((B, 1, N), jnp.float32),
        ),
        grid=(B, n_tiles),
        in_specs=[
            # Flattened P matrices: whole array in SMEM, indexed by program_id(0).
            pl.BlockSpec(memory_space=pltpu.MemorySpace.SMEM),
            # Points: lane-dense (4, tile_n) VMEM blocks.
            pl.BlockSpec((None, 4, tile_n), lambda b, n: (b, 0, n)),
        ],
        out_specs=(
            pl.BlockSpec((None, 2, tile_n), lambda b, n: (b, 0, n)),
            pl.BlockSpec((None, 1, tile_n), lambda b, n: (b, 0, n)),
        ),
        compiler_params=pltpu.CompilerParams(
            dimension_semantics=("parallel", "parallel")),
    )(P_flat, points)

    # Glue to match the PyTorch output layout. NOTE: the permute re-touches 2N
    # floats per batch; if downstream code can consume (B, 2, H, W) directly,
    # drop this transpose for ~25% less HBM traffic.
    pix_coords = pix_flat.reshape(B, 2, height, width).transpose(0, 2, 3, 1)
    next_depth = depth_flat.reshape(B, 1, height, width)
    return pix_coords, next_depth


def _reference(points, K, T, batch_size, height, width, eps=1e-7):
    P = jnp.einsum("bij,bjk->bik", K[:, :3, :], T)          # (B, 3, 4)
    cam = jnp.einsum("bij,bjn->bin", P, points)              # (B, 3, N)
    z = cam[:, 2, :] + eps                                   # (B, N)
    pix = cam[:, :2, :] / z[:, None, :]                      # (B, 2, N)
    next_depth = z.reshape(batch_size, 1, height, width)
    pix = pix.reshape(batch_size, 2, height, width).transpose(0, 2, 3, 1)
    pix = pix.at[..., 0].divide((width - 1) / 2)
    pix = pix.at[..., 1].divide((height - 1) / 2)
    pix = pix - 1.0
    return pix, next_depth


if __name__ == "__main__":
    B, H, W = 2, 16, 16
    N = H * W
    key = jax.random.PRNGKey(0)
    k1, k2, k3 = jax.random.split(key, 3)

    # Homogeneous 3D points (B, 4, N): random xyz, w = 1.
    xyz = jax.random.normal(k1, (B, 3, N), dtype=jnp.float32)
    points = jnp.concatenate([xyz, jnp.ones((B, 1, N), jnp.float32)], axis=1)

    # Camera intrinsics-like K (B, 4, 4) and pose T (B, 4, 4), deterministic.
    K = jnp.tile(jnp.eye(4, dtype=jnp.float32)[None], (B, 1, 1))
    K = K + 0.01 * jax.random.normal(k2, (B, 4, 4), dtype=jnp.float32)
    T = jnp.tile(jnp.eye(4, dtype=jnp.float32)[None], (B, 1, 1))
    T = T.at[:, :3, 3].set(jax.random.normal(k3, (B, 3), dtype=jnp.float32))
    # Keep depths away from zero so the 1/z path is well conditioned.
    points = points.at[:, 2, :].set(jnp.abs(points[:, 2, :]) + 2.0)

    pix_ref, depth_ref = _reference(points, K, T, B, H, W)

    # 1) Single-tile path (N <= cap).
    pix, depth = project3d(points, K, T, B, H, W)
    pix = jax.block_until_ready(pix)
    depth = jax.block_until_ready(depth)
    assert pix.shape == (B, H, W, 2) and depth.shape == (B, 1, H, W)
    assert jnp.allclose(pix, pix_ref, atol=1e-5, rtol=1e-5)
    assert jnp.allclose(depth, depth_ref, atol=1e-5, rtol=1e-5)

    # 2) Force the tiled (B, N/tile_n) grid path with a small cap to exercise it.
    pix_t, depth_t = project3d(points, K, T, B, H, W, tile_n_cap=128)
    pix_t = jax.block_until_ready(pix_t)
    depth_t = jax.block_until_ready(depth_t)
    assert jnp.allclose(pix_t, pix_ref, atol=1e-5, rtol=1e-5)
    assert jnp.allclose(depth_t, depth_ref, atol=1e-5, rtol=1e-5)

    print("KERNEL_OK")
</pallas_src>

<mosaic_0001>
module attributes {stable_mosaic.version = 11 : i64} {
  func.func @_project3d_kernel(%arg0: i32, %arg1: i32, %arg2: memref<2x12xf32, #tpu.memory_space<smem>>, %arg3: memref<1x4x256xf32, #tpu.memory_space<vmem>>, %arg4: memref<1x2x256xf32, #tpu.memory_space<vmem>>, %arg5: memref<1x1x256xf32, #tpu.memory_space<vmem>>) attributes {dimension_semantics = [#tpu.dimension_semantics<parallel>, #tpu.dimension_semantics<parallel>], iteration_bounds = array<i64: 2, 1>, scalar_prefetch = 0 : i64, scratch_operands = 0 : i64, tpu.core_type = #tpu.core_type<tc>, window_params = [{transform_indices = @transform_0, window_bounds = array<i64: 2, 12>}, {transform_indices = @transform_1, window_bounds = array<i64: 1, 4, 256>}, {transform_indices = @transform_2, window_bounds = array<i64: 1, 2, 256>}, {transform_indices = @transform_3, window_bounds = array<i64: 1, 1, 256>}]} {
    %c0 = arith.constant 0 : index
    %c0_0 = arith.constant 0 : index
    %c0_1 = arith.constant 0 : index
    %0 = vector.load %arg3[%c0, %c0_0, %c0_1] : memref<1x4x256xf32, #tpu.memory_space<vmem>>, vector<1x1x256xf32>
    %1 = vector.shape_cast %0 : vector<1x1x256xf32> to vector<1x256xf32>
    %c0_2 = arith.constant 0 : index
    %c1 = arith.constant 1 : index
    %c0_3 = arith.constant 0 : index
    %2 = vector.load %arg3[%c0_2, %c1, %c0_3] : memref<1x4x256xf32, #tpu.memory_space<vmem>>, vector<1x1x256xf32>
    %3 = vector.shape_cast %2 : vector<1x1x256xf32> to vector<1x256xf32>
    %c0_4 = arith.constant 0 : index
    %c2 = arith.constant 2 : index
    %c0_5 = arith.constant 0 : index
    %4 = vector.load %arg3[%c0_4, %c2, %c0_5] : memref<1x4x256xf32, #tpu.memory_space<vmem>>, vector<1x1x256xf32>
    %5 = vector.shape_cast %4 : vector<1x1x256xf32> to vector<1x256xf32>
    %c0_6 = arith.constant 0 : index
    %c3 = arith.constant 3 : index
    %c0_7 = arith.constant 0 : index
    %6 = vector.load %arg3[%c0_6, %c3, %c0_7] : memref<1x4x256xf32, #tpu.memory_space<vmem>>, vector<1x1x256xf32>
    %7 = vector.shape_cast %6 : vector<1x1x256xf32> to vector<1x256xf32>
    %8 = arith.index_cast %arg0 : i32 to index
    %c8 = arith.constant 8 : index
    %9 = memref.load %arg2[%8, %c8] : memref<2x12xf32, #tpu.memory_space<smem>>
    %10 = vector.broadcast %9 : f32 to vector<1x256xf32>
    %11 = arith.mulf %10, %1 : vector<1x256xf32>
    %12 = arith.index_cast %arg0 : i32 to index
    %c9 = arith.constant 9 : index
    %13 = memref.load %arg2[%12, %c9] : memref<2x12xf32, #tpu.memory_space<smem>>
    %14 = vector.broadcast %13 : f32 to vector<1x256xf32>
    %15 = arith.mulf %14, %3 : vector<1x256xf32>
    %16 = arith.addf %11, %15 : vector<1x256xf32>
    %17 = arith.index_cast %arg0 : i32 to index
    %c10 = arith.constant 10 : index
    %18 = memref.load %arg2[%17, %c10] : memref<2x12xf32, #tpu.memory_space<smem>>
    %19 = vector.broadcast %18 : f32 to vector<1x256xf32>
    %20 = arith.mulf %19, %5 : vector<1x256xf32>
    %21 = arith.addf %16, %20 : vector<1x256xf32>
    %22 = arith.index_cast %arg0 : i32 to index
    %c11 = arith.constant 11 : index
    %23 = memref.load %arg2[%22, %c11] : memref<2x12xf32, #tpu.memory_space<smem>>
    %24 = vector.broadcast %23 : f32 to vector<1x256xf32>
    %25 = arith.mulf %24, %7 : vector<1x256xf32>
    %26 = arith.addf %21, %25 : vector<1x256xf32>
    %cst = arith.constant 1.000000e-07 : f32
    %27 = vector.broadcast %cst : f32 to vector<1x256xf32>
    %28 = arith.addf %26, %27 : vector<1x256xf32>
    %29 = tpu.reciprocal %28 : vector<1x256xf32> -> vector<1x256xf32>
    %30 = arith.index_cast %arg0 : i32 to index
    %c0_8 = arith.constant 0 : index
    %31 = memref.load %arg2[%30, %c0_8] : memref<2x12xf32, #tpu.memory_space<smem>>
    %32 = vector.broadcast %31 : f32 to vector<1x256xf32>
    %33 = arith.mulf %32, %1 : vector<1x256xf32>
    %34 = arith.index_cast %arg0 : i32 to index
    %c1_9 = arith.constant 1 : index
    %35 = memref.load %arg2[%34, %c1_9] : memref<2x12xf32, #tpu.memory_space<smem>>
    %36 = vector.broadcast %35 : f32 to vector<1x256xf32>
    %37 = arith.mulf %36, %3 : vector<1x256xf32>
    %38 = arith.addf %33, %37 : vector<1x256xf32>
    %39 = arith.index_cast %arg0 : i32 to index
    %c2_10 = arith.constant 2 : index
    %40 = memref.load %arg2[%39, %c2_10] : memref<2x12xf32, #tpu.memory_space<smem>>
    %41 = vector.broadcast %40 : f32 to vector<1x256xf32>
    %42 = arith.mulf %41, %5 : vector<1x256xf32>
    %43 = arith.addf %38, %42 : vector<1x256xf32>
    %44 = arith.index_cast %arg0 : i32 to index
    %c3_11 = arith.constant 3 : index
    %45 = memref.load %arg2[%44, %c3_11] : memref<2x12xf32, #tpu.memory_space<smem>>
    %46 = vector.broadcast %45 : f32 to vector<1x256xf32>
    %47 = arith.mulf %46, %7 : vector<1x256xf32>
    %48 = arith.addf %43, %47 : vector<1x256xf32>
    %49 = arith.mulf %48, %29 : vector<1x256xf32>
    %cst_12 = arith.constant 0.13333334 : f32
    %50 = vector.broadcast %cst_12 : f32 to vector<1x256xf32>
    %51 = arith.mulf %49, %50 : vector<1x256xf32>
    %cst_13 = arith.constant 1.000000e+00 : f32
    %52 = vector.broadcast %cst_13 : f32 to vector<1x256xf32>
    %53 = arith.subf %51, %52 : vector<1x256xf32>
    %c0_14 = arith.constant 0 : index
    %c0_15 = arith.constant 0 : index
    %c0_16 = arith.constant 0 : index
    %54 = vector.load %arg4[%c0_14, %c0_15, %c0_16] : memref<1x2x256xf32, #tpu.memory_space<vmem>>, vector<1x1x256xf32>
    %55 = vector.shape_cast %54 : vector<1x1x256xf32> to vector<1x256xf32>
    %56 = vector.shape_cast %53 : vector<1x256xf32> to vector<1x1x256xf32>
    tpu.vector_store %arg4[%c0_14, %c0_15, %c0_16], %56 {strides = array<i32>} : memref<1x2x256xf32, #tpu.memory_space<vmem>>, vector<1x1x256xf32>,
    %57 = arith.index_cast %arg0 : i32 to index
    %c4 = arith.constant 4 : index
    %58 = memref.load %arg2[%57, %c4] : memref<2x12xf32, #tpu.memory_space<smem>>
    %59 = vector.broadcast %58 : f32 to vector<1x256xf32>
    %60 = arith.mulf %59, %1 : vector<1x256xf32>
    %61 = arith.index_cast %arg0 : i32 to index
    %c5 = arith.constant 5 : index
    %62 = memref.load %arg2[%61, %c5] : memref<2x12xf32, #tpu.memory_space<smem>>
    %63 = vector.broadcast %62 : f32 to vector<1x256xf32>
    %64 = arith.mulf %63, %3 : vector<1x256xf32>
    %65 = arith.addf %60, %64 : vector<1x256xf32>
    %66 = arith.index_cast %arg0 : i32 to index
    %c6 = arith.constant 6 : index
    %67 = memref.load %arg2[%66, %c6] : memref<2x12xf32, #tpu.memory_space<smem>>
    %68 = vector.broadcast %67 : f32 to vector<1x256xf32>
    %69 = arith.mulf %68, %5 : vector<1x256xf32>
    %70 = arith.addf %65, %69 : vector<1x256xf32>
    %71 = arith.index_cast %arg0 : i32 to index
    %c7 = arith.constant 7 : index
    %72 = memref.load %arg2[%71, %c7] : memref<2x12xf32, #tpu.memory_space<smem>>
    %73 = vector.broadcast %72 : f32 to vector<1x256xf32>
    %74 = arith.mulf %73, %7 : vector<1x256xf32>
    %75 = arith.addf %70, %74 : vector<1x256xf32>
    %76 = arith.mulf %75, %29 : vector<1x256xf32>
    %cst_17 = arith.constant 0.13333334 : f32
    %77 = vector.broadcast %cst_17 : f32 to vector<1x256xf32>
    %78 = arith.mulf %76, %77 : vector<1x256xf32>
    %cst_18 = arith.constant 1.000000e+00 : f32
    %79 = vector.broadcast %cst_18 : f32 to vector<1x256xf32>
    %80 = arith.subf %78, %79 : vector<1x256xf32>
    %c0_19 = arith.constant 0 : index
    %c1_20 = arith.constant 1 : index
    %c0_21 = arith.constant 0 : index
    %81 = vector.load %arg4[%c0_19, %c1_20, %c0_21] : memref<1x2x256xf32, #tpu.memory_space<vmem>>, vector<1x1x256xf32>
    %82 = vector.shape_cast %81 : vector<1x1x256xf32> to vector<1x256xf32>
    %83 = vector.shape_cast %80 : vector<1x256xf32> to vector<1x1x256xf32>
    tpu.vector_store %arg4[%c0_19, %c1_20, %c0_21], %83 {strides = array<i32>} : memref<1x2x256xf32, #tpu.memory_space<vmem>>, vector<1x1x256xf32>,
    %c0_22 = arith.constant 0 : index
    %c0_23 = arith.constant 0 : index
    %c0_24 = arith.constant 0 : index
    %84 = vector.load %arg5[%c0_22, %c0_23, %c0_24] : memref<1x1x256xf32, #tpu.memory_space<vmem>>, vector<1x1x256xf32>
    %85 = vector.shape_cast %84 : vector<1x1x256xf32> to vector<1x256xf32>
    %86 = vector.shape_cast %28 : vector<1x256xf32> to vector<1x1x256xf32>
    tpu.vector_store %arg5[%c0_22, %c0_23, %c0_24], %86 {strides = array<i32>} : memref<1x1x256xf32, #tpu.memory_space<vmem>>, vector<1x1x256xf32>,
    return
  }
  func.func @transform_0(%arg0: i32, %arg1: i32) -> (i32, i32) {
    %c0_i32 = arith.constant 0 : i32
    %c0_i32_0 = arith.constant 0 : i32
    %c0_i32_1 = arith.constant 0 : i32
    return %c0_i32, %c0_i32_0 : i32, i32
  }
  func.func @transform_1(%arg0: i32, %arg1: i32) -> (i32, i32, i32) {
    %c0_i32 = arith.constant 0 : i32
    %c0_i32_0 = arith.constant 0 : i32
    return %arg0, %c0_i32, %arg1 : i32, i32, i32
  }
  func.func @transform_2(%arg0: i32, %arg1: i32) -> (i32, i32, i32) {
    %c0_i32 = arith.constant 0 : i32
    %c0_i32_0 = arith.constant 0 : i32
    return %arg0, %c0_i32, %arg1 : i32, i32, i32
  }
  func.func @transform_3(%arg0: i32, %arg1: i32) -> (i32, i32, i32) {
    %c0_i32 = arith.constant 0 : i32
    %c0_i32_0 = arith.constant 0 : i32
    return %arg0, %c0_i32, %arg1 : i32, i32, i32
  }
}

</mosaic_0001>

<bundles_post_ra>
// kernel: tpu_custom_call.1
= control target key start
LH: loop header
LB: loop body
LE: loop exit
PB: predicated region body
PF: predicated region fallthrough
CT: control target
= control target key end

     0   :  { %9 = vsyncpa [#allocation5], 0  ;;  %s1015_s0 = inlined_call_operand.hbm [shape: f32[2,12], index: 0, kind: input, shape index: {}]   ;;  %s1016_s1 = inlined_call_operand.hbm [shape: f32[2,4,256], index: 1, kind: input, shape index: {}]   ;;  %s1017_s2 = inlined_call_operand.hbm [shape: f32[2,2,256], index: 2, kind: output, shape index: {0}]   ;;  %s1018_s3 = inlined_call_operand.hbm [shape: f32[2,1,256], index: 3, kind: output, shape index: {1}]  }
   0x1   :  { %10 = vsyncpa [#allocation3], 0 }
   0x2   :  { %12 = vsyncpa [#allocation3 + $0x1], 0 }
   0x3   :  { %13 = vsyncpa [#allocation4], 0 }
   0x4   :  { %15 = vsyncpa [#allocation4 + $0x1], 0 }
   0x5   :  { %16 = vsyncpa [#allocation9], 0 }
   0x6   :  { %18 = vsyncpa [#allocation9 + $0x1], 0  ;;  %s772_s12 = smov 0   ;;  %s774_s13 = smov 0  }
   0x7   :  { %s776_s14 = smov 0   ;;  %s778_s15 = smov 0  }
   0x8   :  { %s780_s16 = smov 0   ;;  %s782_s17 = smov 0  }
   0x9 LB: > { %s482_s18 = sadd.s32 4294967295, %s746_s17   ;;  %s483_s19 = sadd.s32 4294967294, %s746_s17   ;;  %s746_s17 = sphi %s782_s17, %s24_s17   ;;  %s742_s16 = sphi %s780_s16, %s1037_s16   ;;  %s738_s15 = sphi %s778_s15, %s1036_s15   ;;  %s734_s14 = sphi %s776_s14, %s1035_s14   ;;  %s730_s13 = sphi %s774_s13, %s1034_s13   ;;  %s726_s12 = sphi %s772_s12, %s1033_s12  }
   0xa   : > { %p79_p0 = scmp.ne.s32.totalorder %s730_s13, %s726_s12  ;;  %p806_p1 = scmp.eq.s32.totalorder %s482_s18, 0 }
   0xb   : > { %p810_p2 = scmp.eq.s32.totalorder %s482_s18, 1  ;;  %p111_p3 = scmp.eq.s32.totalorder %s483_s19, 1 }
   0xc   : > { %p816_p4 = por %p806_p1, %p79_p0  ;;  %p484_p5 = scmp.ge.s32.totalorder %s746_s17, 1 }
   0xd   : > { %p821_p6 = por %p111_p3, %p79_p0  ;;  %p146_p7 = scmp.lt.s32.totalorder %s746_s17, 3 }
   0xe   : > { %s36_s25 = sadd.s32 1, %s742_s16  ;;  %s66_s26 = sadd.s32 1, %s734_s14 }
   0xf   : > { %s1023_s23 = scalar_select %p821_p6, 1, 0 }
  0x10   : > { %p826_p8 = pnand %p484_p5, %p146_p7  ;;  %p38_p12 = scmp.ge.s32.totalorder %s36_s25, 2 }
  0x11   : > { %p73_p13 = scmp.ne.s32.totalorder %s734_s14, %s730_s13  ;;  %p74_p0 = scmp.eq.s32.totalorder %s746_s17, 0 }
  0x12   : > { %p523_p10 = pneg %p826_p8  ;;  %s748_s27 = smov [#allocation2]  }
  0x13   : > { %s1039_s25 = smov (%p38_p12, %s36_s25), 0  ;;  %p845_p3 = por %p74_p0, %p73_p13 }
  0x14   : > { %p524_p11 = pnand %p523_p10, %p806_p1  ;;  %p851_p5 = por %p810_p2, %p73_p13 }
  0x15   : > { %s61_s5 = ssub.s32 %s742_s16, %s1039_s25  ;;  %p539_p7 = scmp.lt.s32.totalorder %s746_s17, 2 }
  0x16   : > { %526 = dma.hbm_to_smem (!%p524_p11), %s1015_s0, 32, %s748_s27, [#allocation5]  }
  0x17   : > { %s1026_s4 = scalar_select %p851_p5, 1, 0 }
  0x18   : > { %p64_p10 = scmp.eq.s32.totalorder %s61_s5, 0  ;;  %s168_s6 = sand.u32 1, %s734_s14  }
  0x19   : > { %s487_s7 = sshll.u32 %s168_s6, 3  ;;  %s510_s9 = sshll.u32 %s742_s16, 7 }
  0x1a   : > { %s860_s8 = scalar_select %p64_p10, %s734_s14, %s66_s26  }
  0x1b   : > { %s180_s18 = scalar_lea.hbm %s1016_s1, %s510_s9  ;;  %s172_s19 = scalar_lea.vmem [#allocation6], %s487_s7 }
  0x1c   : > { %s182_s27 = sshll.u32 %s172_s19, 4  ;;  %p868_p2 = pnand %p539_p7, %p845_p3  ;;  %s183_s27 = int_to_ptr.vmem [resolvable:$true] %s182_s27 }
  0x1d   : > { %s169_s28 = scalar_lea.sflag [#allocation3], %s168_s6  ;;  %s617_s29 = scalar_lea.vmem %s183_s27, 128 }
  0x1e   : > { %p606_p11 = pneg %p868_p2  ;;  %p618_p12 = scmp.ne.s32.totalorder %s183_s27, %s617_s29 }
  0x1f   : > { %s749_s26 = smov [#allocation6]  }
  0x20   : > { %p620_p13 = pnand %p618_p12, %p606_p11  ;;  %s622_s5 = sshll.u32 %s749_s26, 4  ;;  %s623_s5 = int_to_ptr.vmem [resolvable:$false] %s622_s5 }
  0x21   : > { %s624_s9 = scalar_lea.vmem %s623_s5, 256  ;;  %p625_p10 = scmp.lt.s32.totalorder %s183_s27, %s623_s5 }
  0x22   : > { %p621_p0 = pneg %p620_p13  ;;  %p626_p9 = scmp.lt.s32.totalorder %s624_s9, %s617_s29 }
  0x24   : > { %p627_p6 = por %p626_p9, %p625_p10 }
  0x26   : > { %p628_p5 = pnand %p627_p6, %p621_p0 }
  0x28   : > { %631 = shalt.err (!%p628_p5)
}
  0x29   : > { %530 = dma.hbm_to_vmem [thread:$0]  (!%p868_p2), %s180_s18, 128, %s183_s27, %s169_s28  }
  0x2a   : > { %191 = sbr.rel (%p826_p8) target bundleno = 115 (0x73), region = 28 }
  0x2f   : > { %709 = dma.done.wait (%p806_p1), [#allocation5], 32  }
  0x30   : > { %711 = vsyncadd (%p806_p1), [#allocation5], 4294967264  ;;  %s883_s30 = sand.u32 1, %s730_s13  }
  0x31   : > { %s492_s6 = sshll.u32 %s883_s30, 3  ;;  %s198_s7 = scalar_lea.sflag [#allocation3], %s883_s30 }
  0x32   : > { %s201_s10 = scalar_lea.vmem [#allocation6], %s492_s6 }
  0x33   : > { %713 = dma.done.wait (%p816_p4), %s198_s7, 128  }
  0x34   : > { %715 = vsyncadd (%p816_p4), %s198_s7, 4294967168 }
  0x35   : > { %206 = sfence }
  0x36   : > { %s892_s24 = sshll.u32 %s738_s15, 7  ;;  %v233_v0 = vld [vmem:[%s201_s10] ss:$4 sm:$0x3]  ;;  %v283_v13 = vlaneseq  ;;  %p1030_p4 = scmp.ne.s32.totalorder %s1026_s4, 0 }
  0x37   : > { %s241_s20 = sadd.s32 8, %s892_s24  ;;  %s245_s18 = sadd.s32 9, %s892_s24  ;;  %v495_v1 = vld [vmem:[%s201_s10 + $0x1] ss:$4 sm:$0x3] }
  0x38   : > { %s242_s11 = sld [smem:[#allocation2 + %s241_s20]]  ;;  %s250_s27 = sadd.s32 10, %s892_s24  ;;  %v905_v2 = vld [vmem:[%s201_s10 + $0x2] ss:$4 sm:$0x3]  ;;  %vm927_vm0 = vcmp.lt.s32.totalorder %v283_v13, 256 }
  0x39   : > { %s246_s19 = sld [smem:[#allocation2 + %s245_s18]]  ;;  %s255_s22 = sadd.s32 11, %s892_s24  ;;  %v907_v4 = vld [vmem:[%s201_s10 + $0x3] ss:$4 sm:$0x3] }
  0x3a   : > { %s251_s21 = sld [smem:[#allocation2 + %s250_s27]]  ;;  %s265_s29 = sadd.s32 1, %s892_s24 }
  0x3b   : > { %s256_s28 = sld [smem:[#allocation2 + %s255_s22]]  ;;  %s270_s5 = sadd.s32 2, %s892_s24 }
  0x3c   : > { %s900_s26 = sld [smem:[#allocation2 + %s892_s24]]  ;;  %s275_s7 = sadd.s32 3, %s892_s24 }
  0x3d   : > { %s903_s9 = sld [smem:[#allocation2 + %s265_s29]]  ;;  %s288_s20 = sadd.s32 4, %s892_s24 }
  0x3e   : > { %v243_v3 = vstv %s242_s11  ;;  %s909_s6 = sld [smem:[#allocation2 + %s270_s5]]  ;;  %s292_s18 = sadd.s32 5, %s892_s24 }
  0x3f   : > { %v244_v5 = vmul.f32 %v243_v3, %v233_v0  ;;  %v247_v6 = vstv %s246_s19  ;;  %s289_s27 = sld [smem:[#allocation2 + %s288_s20]]  ;;  %s297_s11 = sadd.s32 6, %s892_s24 }
  0x40   : > { %v248_v7 = vmul.f32 %v495_v1, %v247_v6  ;;  %v252_v8 = vstv %s251_s21  ;;  %s293_s10 = sld [smem:[#allocation2 + %s292_s18]]  ;;  %s302_s19 = sadd.s32 7, %s892_s24 }
  0x41   : > { %v253_v9 = vmul.f32 %v905_v2, %v252_v8  ;;  %v257_v10 = vstv %s256_s28  ;;  %s918_s22 = sld [smem:[#allocation2 + %s297_s11]]  ;;  %s494_s29 = sshll.u32 %s883_s30, 1 }
  0x42   : > { %v249_v11 = vadd.f32 %v248_v7, %v244_v5  ;;  %v258_v12 = vmul.f32 %v907_v4, %v257_v10  ;;  %v263_v15 = vstv %s900_s26  ;;  %s922_s21 = sld [smem:[#allocation2 + %s275_s7]]  ;;  %s229_s5 = scalar_lea.vmem [#allocation8], %s494_s29 }
  0x43   : > { %v267_v16 = vstv %s903_s9  ;;  %s925_s28 = sld [smem:[#allocation2 + %s302_s19]]  ;;  %s351_s20 = sshll.u32 %s229_s5, 4  ;;  %v264_v18 = vmul.f32 %v263_v15, %v233_v0  ;;  %s931_s20 = int_to_ptr.vmem [resolvable:$true] %s351_s20 }
  0x44   : > { %v254_v14 = vadd.f32 %v253_v9, %v249_v11  ;;  %v268_v22 = vmul.f32 %v495_v1, %v267_v16  ;;  %s512_s24 = sshll.u32 %s738_s15, 5  ;;  %v272_v25 = vstv %s909_s6  ;;  %s319_s18 = scalar_lea.sflag [#allocation9], %s883_s30 }
  0x45   : > { %v290_v20 = vstv %s289_s27  ;;  %s349_s7 = scalar_lea.hbm %s1018_s3, %s512_s24  ;;  %s632_s27 = scalar_lea.vmem %s931_s20, 32 }
  0x46   : > { %v259_v17 = vadd.f32 %v258_v12, %v254_v14  ;;  %v291_v23 = vmul.f32 %v290_v20, %v233_v0  ;;  %v294_v24 = vstv %s293_s10  ;;  %p633_p1 = scmp.ne.s32.totalorder %s931_s20, %s632_s27  ;;  %s750_s11 = smov [#allocation8]  }
  0x47   : > { %v295_v26 = vmul.f32 %v495_v1, %v294_v24  ;;  %v299_v27 = vstv %s918_s22  ;;  %s636_s10 = sshll.u32 %s750_s11, 4  ;;  %s637_s10 = int_to_ptr.vmem [resolvable:$false] %s636_s10 }
  0x48   : > { %v260_v21 = vadd.f32 1e-07, %v259_v17  ;;  %p634_p6 = pnand %p633_p1, %p1030_p4  ;;  %s638_s6 = scalar_lea.vmem %s637_s10, 64 }
  0x49   : > { %p639_p9 = scmp.lt.s32.totalorder %s931_s20, %s637_s10  ;;  %p640_p3 = scmp.lt.s32.totalorder %s638_s6, %s632_s27 }
  0x4a   : > { %591 = vrcp.f32 %v260_v21  ;;  %312 = vst.msk [vmem:[%s229_s5] sm:$0x3] %vm927_vm0, %v260_v21  ;;  %p635_p8 = pneg %p634_p6 }
  0x4b   : > { %p641_p5 = por %p640_p3, %p639_p9 }
  0x4d   : > { %p642_p7 = pnand %p641_p5, %p635_p8 }
  0x4f   : > { %645 = shalt.err (!%p642_p7)
}
  0x50   : > { %s646_s19 = scalar_lea.hbm %s349_s7, 32  ;;  %s650_s5 = scalar_lea.hbm %s1018_s3, 64 }
  0x51   : > { %p647_p2 = scmp.ne.s32.totalorder %s349_s7, %s646_s19  ;;  %p651_p13 = scmp.lt.s32.totalorder %s349_s7, %s1018_s3 }
  0x52   : > { %p652_p0 = scmp.lt.s32.totalorder %s650_s5, %s646_s19 }
  0x53   : > { %p648_p11 = pnand %p647_p2, %p1030_p4 }
  0x54   : > { %p653_p10 = por %p652_p0, %p651_p13 }
  0x55   : > { %p649_p12 = pneg %p648_p11 }
  0x57   : > { %p654_p1 = pnand %p653_p10, %p649_p12 }
  0x59   : > { %657 = shalt.err (!%p654_p1)
}
  0x5a   : > { %520 = dma.vmem_to_hbm [thread:$0]  (%p1030_p4), %s931_s20, 32, %s349_s7, %s319_s18   ;;  %v269_v28 = vadd.f32 %v268_v22, %v264_v18  ;;  %v273_v29 = vmul.f32 %v905_v2, %v272_v25  ;;  %v296_v30 = vadd.f32 %v295_v26, %v291_v23  ;;  %v300_v31 = vmul.f32 %v905_v2, %v299_v27  ;;  %v592_v40 = vpop.eup %591 }
  0x5b   : > { %v277_v32 = vstv %s922_s21  ;;  %v304_v33 = vstv %s925_s28  ;;  %s493_s9 = sshll.u32 %s883_s30, 2  ;;  %s511_s18 = sshll.u32 %s738_s15, 6 }
  0x5c   : > { %v274_v34 = vadd.f32 %v273_v29, %v269_v28  ;;  %v278_v35 = vmul.f32 %v907_v4, %v277_v32  ;;  %v301_v36 = vadd.f32 %v300_v31, %v296_v30  ;;  %v305_v37 = vmul.f32 %v907_v4, %v304_v33  ;;  %s222_s20 = scalar_lea.vmem [#allocation7], %s493_s9  ;;  %s333_s27 = scalar_lea.hbm %s1017_s2, %s511_s18 }
  0x5d   : > { %s335_s7 = sshll.u32 %s222_s20, 4  ;;  %s314_s15 = scalar_lea.sflag [#allocation4], %s883_s30  ;;  %s966_s7 = int_to_ptr.vmem [resolvable:$true] %s335_s7 }
  0x5e   : > { %v279_v38 = vadd.f32 %v278_v35, %v274_v34  ;;  %v306_v39 = vadd.f32 %v305_v37, %v301_v36  ;;  %s658_s11 = scalar_lea.vmem %s966_s7, 64  ;;  %s751_s10 = smov [#allocation7]  }
  0x5f   : > { %p659_p6 = scmp.ne.s32.totalorder %s966_s7, %s658_s11  ;;  %s662_s6 = sshll.u32 %s751_s10, 4  ;;  %s663_s6 = int_to_ptr.vmem [resolvable:$false] %s662_s6 }
  0x60   : > { %v280_v41 = vmul.f32 %v592_v40, %v279_v38  ;;  %v307_v42 = vmul.f32 %v592_v40, %v306_v39  ;;  %s664_s19 = scalar_lea.vmem %s663_s6, 128  ;;  %p665_p3 = scmp.lt.s32.totalorder %s966_s7, %s663_s6 }
  0x61   : > { %p660_p8 = pnand %p659_p6, %p1030_p4  ;;  %p666_p5 = scmp.lt.s32.totalorder %s664_s19, %s658_s11 }
  0x62   : > { %v281_v43 = vmul.f32 0.13333334, %v280_v41  ;;  %v308_v44 = vmul.f32 0.13333334, %v307_v42 }
  0x63   : > { %p661_p9 = pneg %p660_p8  ;;  %p667_p7 = por %p666_p5, %p665_p3 }
  0x64   : > { %v499_v45 = vadd.f32 -1.0, %v281_v43  ;;  %v500_v46 = vadd.f32 -1.0, %v308_v44 }
  0x65   : > { %p668_p2 = pnand %p667_p7, %p661_p9 }
  0x66   : > { %287 = vst.msk [vmem:[%s222_s20] ss:$2 sm:$0x3] %vm927_vm0, %v499_v45  ;;  %501 = vst.msk [vmem:[%s222_s20 + $0x1] ss:$2 sm:$0x3] %vm927_vm0, %v500_v46 }
  0x67   : > { %671 = shalt.err (!%p668_p2)
}
  0x68   : > { %s672_s22 = scalar_lea.hbm %s333_s27, 64  ;;  %s676_s5 = scalar_lea.hbm %s1017_s2, 128 }
  0x69   : > { %p673_p11 = scmp.ne.s32.totalorder %s333_s27, %s672_s22  ;;  %p677_p0 = scmp.lt.s32.totalorder %s333_s27, %s1017_s2 }
  0x6a   : > { %p678_p10 = scmp.lt.s32.totalorder %s676_s5, %s672_s22 }
  0x6b   : > { %p674_p12 = pnand %p673_p11, %p1030_p4 }
  0x6c   : > { %p679_p1 = por %p678_p10, %p677_p0 }
  0x6d   : > { %p675_p13 = pneg %p674_p12 }
  0x6f   : > { %p680_p6 = pnand %p679_p1, %p675_p13 }
  0x71   : > { %683 = shalt.err (!%p680_p6)
}
  0x72   : > { %519 = dma.vmem_to_hbm [thread:$0]  (%p1030_p4), %s966_s7, 64, %s333_s27, %s314_s15  }
  0x73 PF: > { %s363_s9 = sand.u32 1, %s726_s12   ;;  %p1031_p8 = scmp.ne.s32.totalorder %s1023_s23, 0 }
  0x74   : > { %p1032_p9 = scmp.ge.s32.totalorder %s746_s17, 2  ;;  %s364_s20 = scalar_lea.sflag [#allocation4], %s363_s9 }
  0x76   : > { %p532_p3 = pnand %p1032_p9, %p1031_p8 }
  0x78   : > { %p533_p5 = pneg %p532_p3 }
  0x7a   : > { %717 = dma.done.wait (%p533_p5), %s364_s20, 64  }
  0x7b   : > { %719 = vsyncadd (%p533_p5), %s364_s20, 4294967232  ;;  %s373_s18 = scalar_lea.sflag [#allocation9], %s363_s9 }
  0x7c   : > { %721 = dma.done.wait (%p533_p5), %s373_s18, 32  }
  0x7d   : > { %723 = vsyncadd (%p533_p5), %s373_s18, 4294967264  ;;  %s24_s17 = sadd.s32 1, %s746_s17   ;;  %s1033_s12 = smov %s730_s13 }
  0x7e   : > { %p21_p7 = scmp.ge.s32.totalorder %s24_s17, 4   ;;  %s1034_s13 = smov %s734_s14 }
  0x7f   : > { %s1035_s14 = smov %s860_s8  ;;  %s1036_s15 = smov %s742_s16 }
  0x80   : > { %s1037_s16 = smov %s1039_s25  ;;  %23 = sbr.rel (!%p21_p7) target bundleno = 9 (0x9), region = 99 }
  0x85   :  { %378 = vsyncpa [#allocation3], 1 }
  0x86   :  { %380 = vsyncpa [#allocation3 + $0x1], 1 }
  0x87   :  { %381 = vsyncpa [#allocation4], 1 }
  0x88   :  { %383 = vsyncpa [#allocation4 + $0x1], 1 }
  0x89   :  { %384 = vsyncpa [#allocation9], 1 }
  0x8a   :  { %386 = vsyncpa [#allocation9 + $0x1], 1 }
  0x8b   :  { %387 = vsyncpa [#allocation5], 1 }
  0x8c   :  { %389 = vsyncpa [#allocation5 + $0x1], 1 }

</bundles_post_ra>
